<compile_context>
chip_gen: v7x
topology: tpu7x:2x2x1
jax: 0.10.0
libtpu: 0.0.40
codegen_flags: <defaults>
</compile_context>

<pallas_src>
import jax
import jax.numpy as jnp
from jax.experimental import pallas as pl
from jax.experimental.pallas import tpu as pltpu


def _time_embed_kernel(x_ref, wb_ref, o_ref):
    # x_ref : (tile_n, 1)     per-row-block scalars (auto-pipelined)
    # wb_ref: (2, tile_e)     row 0 = weight, row 1 = bias (per E-block)
    # o_ref : (tile_n, tile_e)
    x = x_ref[...].astype(jnp.float32)        # (tile_n, 1)
    w = wb_ref[0:1, :].astype(jnp.float32)    # (1, tile_e)
    b = wb_ref[1:2, :].astype(jnp.float32)    # (1, tile_e)
    o_ref[...] = (x * w + b).astype(o_ref.dtype)


def _round_up(x, m):
    return ((x + m - 1) // m) * m


def time_embedding(time_interval, weight, bias, *, max_tile_n=512, max_tile_e=1024):
    """time_interval: (..., 1); weight: (E, 1); bias: (E,) -> (..., E)."""
    orig_lead = time_interval.shape[:-1]
    assert time_interval.shape[-1] == 1
    E = weight.shape[0]
    out_dtype = time_interval.dtype

    N = 1
    for d in orig_lead:
        N *= d

    x = time_interval.reshape(N, 1)

    # ---- Row tiling: minimal sublane padding, >= 2 row blocks when possible
    # (megacore on v7x), 512-row tiles for large N. -------------------------
    N_8 = max(8, _round_up(N, 8))
    if N_8 <= max_tile_n:
        n_row_blocks = 2 if N_8 >= 16 else 1
        tile_n = _round_up(pl.cdiv(N_8, n_row_blocks), 8)
    else:
        tile_n = max_tile_n
        n_row_blocks = pl.cdiv(N_8, tile_n)
    N_pad = n_row_blocks * tile_n
    if N_pad != N:
        x = jnp.pad(x, ((0, N_pad - N), (0, 0)))

    # ---- Fuse weight + bias into a single resident f32 (2, E_pad) input. ---
    wb = jnp.concatenate(
        [weight.reshape(1, E).astype(jnp.float32),
         bias.reshape(1, E).astype(jnp.float32)],
        axis=0,
    )
    E_pad = _round_up(E, 128)
    if E_pad != E:
        wb = jnp.pad(wb, ((0, 0), (0, E_pad - E)))

    # ---- E tile: largest multiple of 128 dividing E_pad, capped at max_tile_e.
    if E_pad <= max_tile_e:
        tile_e = E_pad
    else:
        tile_e = 128
        cand = (max_tile_e // 128) * 128
        while cand >= 128:
            if E_pad % cand == 0:
                tile_e = cand
                break
            cand -= 128

    grid = (n_row_blocks, E_pad // tile_e)

    itemsize = jnp.dtype(out_dtype).itemsize
    cost = pl.CostEstimate(
        flops=2 * N_pad * E_pad,
        transcendentals=0,
        bytes_accessed=(N_pad * E_pad) * itemsize + N_pad * 4 + 2 * E_pad * 4,
    )

    out = pl.pallas_call(
        _time_embed_kernel,
        out_shape=jax.ShapeDtypeStruct((N_pad, E_pad), out_dtype),
        grid_spec=pltpu.PrefetchScalarGridSpec(
            num_scalar_prefetch=0,
            grid=grid,
            in_specs=[
                pl.BlockSpec((tile_n, 1), lambda i, j: (i, 0)),   # x, per row block
                pl.BlockSpec((2, tile_e), lambda i, j: (0, j)),   # [w; b], per E block
            ],
            out_specs=pl.BlockSpec((tile_n, tile_e), lambda i, j: (i, j)),
        ),
        compiler_params=pltpu.CompilerParams(
            dimension_semantics=("parallel", "parallel")),
        cost_estimate=cost,
    )(x, wb)

    # Only pay the slice (an extra HBM pass) when padding was actually applied.
    if N_pad != N or E_pad != E:
        out = out[:N, :E]
    return out.reshape(*orig_lead, E)


if __name__ == "__main__":
    # Module default embed_size=512; small batch/seq.
    B, S, E = 2, 8, 512
    key = jax.random.PRNGKey(0)
    k_x, k_w, k_b = jax.random.split(key, 3)

    time_interval = jax.random.normal(k_x, (B, S, 1), dtype=jnp.float32)
    # Deterministic "nn.Linear(1, E)" parameters (synthetic, not a checkpoint).
    weight = jax.random.normal(k_w, (E, 1), dtype=jnp.float32) * 0.02
    bias = jax.random.normal(k_b, (E,), dtype=jnp.float32) * 0.02

    y = time_embedding(time_interval, weight, bias)
    jax.block_until_ready(y)

    y_ref = time_interval @ weight.T + bias
    assert y.shape == (B, S, E)
    assert jnp.allclose(y, y_ref, atol=1e-6, rtol=1e-6)

    # Second check: row count not divisible by 8 (exercises the padding path).
    B2, S2 = 3, 7
    ti2 = jax.random.normal(jax.random.PRNGKey(1), (B2, S2, 1), dtype=jnp.float32)
    y2 = time_embedding(ti2, weight, bias)
    jax.block_until_ready(y2)
    y2_ref = ti2 @ weight.T + bias
    assert y2.shape == (B2, S2, E)
    assert jnp.allclose(y2, y2_ref, atol=1e-6, rtol=1e-6)

    # Third check: larger N to exercise the 512-row tile path.
    B3, S3 = 16, 128
    ti3 = jax.random.normal(jax.random.PRNGKey(2), (B3, S3, 1), dtype=jnp.float32)
    y3 = time_embedding(ti3, weight, bias)
    jax.block_until_ready(y3)
    y3_ref = ti3 @ weight.T + bias
    assert y3.shape == (B3, S3, E)
    assert jnp.allclose(y3, y3_ref, atol=1e-6, rtol=1e-6)

    print("KERNEL_OK")
</pallas_src>

<mosaic_0001>
module attributes {stable_mosaic.version = 11 : i64} {
  func.func @_time_embed_kernel(%arg0: i32, %arg1: i32, %arg2: memref<8x1xf32, #tpu.memory_space<vmem>>, %arg3: memref<2x512xf32, #tpu.memory_space<vmem>>, %arg4: memref<8x512xf32, #tpu.memory_space<vmem>>) attributes {dimension_semantics = [#tpu.dimension_semantics<parallel>, #tpu.dimension_semantics<parallel>], iteration_bounds = array<i64: 2, 1>, scalar_prefetch = 0 : i64, scratch_operands = 0 : i64, tpu.core_type = #tpu.core_type<tc>, window_params = [{transform_indices = @transform_0, window_bounds = array<i64: 8, 1>}, {transform_indices = @transform_1, window_bounds = array<i64: 2, 512>}, {transform_indices = @transform_2, window_bounds = array<i64: 8, 512>}]} {
    %c0 = arith.constant 0 : index
    %c0_0 = arith.constant 0 : index
    %0 = vector.load %arg2[%c0, %c0_0] : memref<8x1xf32, #tpu.memory_space<vmem>>, vector<8x1xf32>
    %c0_1 = arith.constant 0 : index
    %c0_2 = arith.constant 0 : index
    %1 = vector.load %arg3[%c0_1, %c0_2] : memref<2x512xf32, #tpu.memory_space<vmem>>, vector<1x512xf32>
    %c1 = arith.constant 1 : index
    %c0_3 = arith.constant 0 : index
    %2 = vector.load %arg3[%c1, %c0_3] : memref<2x512xf32, #tpu.memory_space<vmem>>, vector<1x512xf32>
    %3 = vector.broadcast %0 : vector<8x1xf32> to vector<8x512xf32>
    %4 = vector.broadcast %1 : vector<1x512xf32> to vector<8x512xf32>
    %5 = arith.mulf %3, %4 : vector<8x512xf32>
    %6 = vector.broadcast %2 : vector<1x512xf32> to vector<8x512xf32>
    %7 = arith.addf %5, %6 : vector<8x512xf32>
    %c0_4 = arith.constant 0 : index
    %c0_5 = arith.constant 0 : index
    %8 = vector.load %arg4[%c0_4, %c0_5] : memref<8x512xf32, #tpu.memory_space<vmem>>, vector<8x512xf32>
    tpu.vector_store %arg4[%c0_4, %c0_5], %7 {strides = array<i32>} : memref<8x512xf32, #tpu.memory_space<vmem>>, vector<8x512xf32>,
    return
  }
  func.func @transform_0(%arg0: i32, %arg1: i32) -> (i32, i32) {
    %c0_i32 = arith.constant 0 : i32
    %c0_i32_0 = arith.constant 0 : i32
    return %arg0, %c0_i32 : i32, i32
  }
  func.func @transform_1(%arg0: i32, %arg1: i32) -> (i32, i32) {
    %c0_i32 = arith.constant 0 : i32
    %c0_i32_0 = arith.constant 0 : i32
    return %c0_i32, %arg1 : i32, i32
  }
  func.func @transform_2(%arg0: i32, %arg1: i32) -> (i32, i32) {
    %c0_i32 = arith.constant 0 : i32
    return %arg0, %arg1 : i32, i32
  }
}

</mosaic_0001>

<bundles_post_ra>
// kernel: tpu_custom_call.1
= control target key start
LH: loop header
LB: loop body
LE: loop exit
PB: predicated region body
PF: predicated region fallthrough
CT: control target
= control target key end

     0   :  { %7 = vsyncpa [#allocation3], 0  ;;  %s632_s0 = inlined_call_operand.vmem [shape: f32[16,1], index: 0, kind: input, shape index: {}]   ;;  %s633_s1 = inlined_call_operand.vmem [shape: f32[2,512], index: 1, kind: input, shape index: {}]   ;;  %s634_s2 = inlined_call_operand.hbm [shape: f32[16,512], index: 2, kind: output, shape index: {}]  }
   0x1   :  { %9 = vsyncpa [#allocation3 + $0x1], 0  ;;  %s510_s9 = smov 0   ;;  %s512_s10 = smov 0  }
   0x2   :  { %s514_s11 = smov 0   ;;  %s516_s12 = smov 0  }
   0x3   :  { %s518_s13 = smov 0   ;;  %s520_s14 = smov 0  }
   0x4 LB: > { %s341_s15 = sadd.s32 4294967295, %s491_s14   ;;  %s342_s16 = sadd.s32 4294967294, %s491_s14   ;;  %s491_s14 = sphi %s520_s14, %s15_s14   ;;  %s487_s13 = sphi %s518_s13, %s641_s13   ;;  %s483_s12 = sphi %s516_s12, %s640_s12   ;;  %s479_s11 = sphi %s514_s11, %s639_s11   ;;  %s475_s10 = sphi %s512_s10, %s638_s10   ;;  %s471_s9 = sphi %s510_s9, %s637_s9  }
   0x5   : > { %s27_s17 = sadd.s32 1, %s487_s13  ;;  %s88_s18 = sadd.s32 1, %s479_s11 }
   0x6   : > { %p29_p0 = scmp.ge.s32.totalorder %s27_s17, 2  ;;  %p98_p1 = scmp.ne.s32.totalorder %s479_s11, %s475_s10 }
   0x7   : > { %p99_p2 = scmp.eq.s32.totalorder %s341_s15, 1  ;;  %p104_p3 = scmp.ne.s32.totalorder %s475_s10, %s471_s9 }
   0x8   : > { %s643_s17 = smov (%p29_p0, %s27_s17), 0  ;;  %p105_p5 = scmp.eq.s32.totalorder %s342_s16, 1 }
   0x9   : > { %p550_p4 = por %p99_p2, %p98_p1  ;;  %s83_s20 = ssub.s32 %s487_s13, %s643_s17 }
   0xa   : > { %p346_p6 = scmp.ge.s32.totalorder %s491_s14, 1  ;;  %p86_p7 = scmp.eq.s32.totalorder %s83_s20, 0 }
   0xb   : > { %p557_p8 = por %p105_p5, %p104_p3  ;;  %p139_p9 = scmp.lt.s32.totalorder %s491_s14, 3 }
   0xc   : > { %s563_s22 = scalar_select %p86_p7, %s479_s11, %s88_s18  }
   0xd   : > { %p140_p10 = pnand %p346_p6, %p139_p9 }
   0xe   : > { %p165_p11 = scmp.lt.s32.totalorder (!%p140_p10), %s483_s12, 1  ;;  %v493_v0 = vmov (!%p140_p10), 0   ;;  %v186_v2 = vlaneseq (!%p140_p10)  ;;  %s162_s28 = sand.u32 (!%p140_p10), 1, %s475_s10   ;;  %v177_v8 = vld [vmem:[%s633_s1] ss:$2 sm:$0xf] (!%p140_p10) }
   0xf   : > { %143 = sbr.rel (%p140_p10) target bundleno = 174 (0xae), region = 28  ;;  %412 = vset.pattern.permute.xlu0 (!%p140_p10), %v493_v0  ;;  %s347_s3 = sshll.u32 (!%p140_p10), %s162_s28, 5  ;;  %v349_v9 = vld [vmem:[%s633_s1 + $0x1] ss:$2 sm:$0xf] (!%p140_p10) }
  0x10   : > { %v187_v3 = vshrl.u32 (!%p140_p10), %v186_v2, 7  ;;  %s355_s6 = sshll.u32 (!%p140_p10), %s483_s12, 9  ;;  %s164_s7 = scalar_lea.vmem (!%p140_p10), [#allocation2], %s347_s3 }
  0x11   : > { %s256_s8 = sshll.u32 (!%p140_p10), %s164_s7, 4  ;;  %s583_s18 = scalar_lea.hbm (!%p140_p10), %s634_s2, %s355_s6  ;;  %s585_s8 = int_to_ptr.vmem [resolvable:$true] %s256_s8 }
  0x12   : > { %v188_v4 = vsub.s32 (!%p140_p10), 0, %v187_v3  ;;  %v192_v5 = vsub.s32 (!%p140_p10), 1, %v187_v3  ;;  %v196_v6 = vsub.s32 (!%p140_p10), 2, %v187_v3  ;;  %v200_v7 = vsub.s32 (!%p140_p10), 3, %v187_v3  ;;  %s413_s20 = scalar_lea.vmem (!%p140_p10), %s585_s8, 512 }
  0x13   : > { %p414_p12 = scmp.ne.s32.totalorder (!%p140_p10), %s585_s8, %s413_s20 }
  0x14   : > { %v189_v10 = vrot.slane (!%p140_p10), %v177_v8, %v188_v4  ;;  %v193_v11 = vrot.slane (!%p140_p10), %v177_v8, %v192_v5  ;;  %v197_v12 = vrot.slane (!%p140_p10), %v177_v8, %v196_v6  ;;  %v201_v13 = vrot.slane (!%p140_p10), %v177_v8, %v200_v7 }
  0x15   : > { %v214_v14 = vrot.slane (!%p140_p10), %v349_v9, %v188_v4  ;;  %v218_v15 = vrot.slane (!%p140_p10), %v349_v9, %v192_v5  ;;  %v222_v16 = vrot.slane (!%p140_p10), %v349_v9, %v196_v6  ;;  %v226_v17 = vrot.slane (!%p140_p10), %v349_v9, %v200_v7  ;;  %p415_p13 = pnand (!%p140_p10), %p414_p12, %p550_p4 }
  0x16   : > { %s166_s23 = scalar_select %p165_p11, %s483_s12, 1 }
  0x17   : > { %s240_s12 = scalar_lea.sflag [#allocation3], %s162_s28  ;;  %p416_p0 = pneg %p415_p13 }
  0x18   : > { %s348_s24 = sshll.u32 %s166_s23, 3  ;;  %s494_s23 = smov [#allocation2]  }
  0x19   : > { %s168_s27 = scalar_lea.vmem %s632_s0, %s348_s24  ;;  %s417_s24 = sshll.u32 %s494_s23, 4  ;;  %s418_s24 = int_to_ptr.vmem [resolvable:$false] %s417_s24 }
  0x1a   : > { %v176_v1 = vld [vmem:[%s168_s27] sm:$0xff]  ;;  %s419_s25 = scalar_lea.vmem %s418_s24, 1024  ;;  %p420_p1 = scmp.lt.s32.totalorder %s585_s8, %s418_s24 }
  0x1b   : > { %182 = vperm.xlu0 %412, %v176_v1   ;;  %p421_p2 = scmp.lt.s32.totalorder %s419_s25, %s413_s20 }
  0x1d   : > { %p422_p3 = por %p421_p2, %p420_p1 }
  0x1f   : > { %p423_p5 = pnand %p422_p3, %p416_p0 }
  0x9a   : > { %v183_v18 = vpop.permute.xlu0 %182 }
  0x9b   : > { %v206_v19 = vmul.f32 %v189_v10, %v183_v18  ;;  %v207_v20 = vmul.f32 %v193_v11, %v183_v18  ;;  %v208_v21 = vmul.f32 %v197_v12, %v183_v18  ;;  %v209_v22 = vmul.f32 %v201_v13, %v183_v18 }
  0x9d   : > { %v231_v23 = vadd.f32 %v214_v14, %v206_v19  ;;  %v232_v24 = vadd.f32 %v218_v15, %v207_v20  ;;  %v233_v25 = vadd.f32 %v222_v16, %v208_v21  ;;  %v234_v26 = vadd.f32 %v226_v17, %v209_v22 }
  0x9f   : > { %235 = vst [vmem:[%s164_s7] sm:$0xff] %v231_v23  ;;  %236 = vst [vmem:[%s164_s7 + $0x8] sm:$0xff] %v232_v24 }
  0xa0   : > { %237 = vst [vmem:[%s164_s7 + $0x10] sm:$0xff] %v233_v25  ;;  %238 = vst [vmem:[%s164_s7 + $0x18] sm:$0xff] %v234_v26 }
  0xa1   : > { %426 = shalt.err (!%p423_p5)
}
  0xa2   : > { %s427_s26 = scalar_lea.hbm %s583_s18, 512  ;;  %s431_s29 = scalar_lea.hbm %s634_s2, 1024 }
  0xa3   : > { %p428_p6 = scmp.ne.s32.totalorder %s583_s18, %s427_s26  ;;  %p432_p10 = scmp.lt.u32.totalorder %s583_s18, %s634_s2 }
  0xa4   : > { %p433_p11 = scmp.lt.u32.totalorder %s431_s29, %s427_s26  ;;  %p435_p13 = scmp.lt.u32.totalorder %s427_s26, %s583_s18 }
  0xa5   : > { %p429_p7 = pnand %p428_p6, %p550_p4 }
  0xa6   : > { %p434_p12 = por %p433_p11, %p432_p10 }
  0xa7   : > { %p430_p9 = pneg %p429_p7 }
  0xa8   : > { %p436_p0 = por %p435_p13, %p434_p12 }
  0xaa   : > { %p437_p1 = pnand %p436_p0, %p430_p9 }
  0xac   : > { %440 = shalt.err (!%p437_p1)
}
  0xad   : > { %356 = dma.vmem_to_hbm [thread:$0]  (%p550_p4), %s585_s8, 512, %s583_s18, %s240_s12  }
  0xae PF: > { %p362_p2 = scmp.ge.s32.totalorder %s491_s14, 2  ;;  %s268_s4 = sand.u32 1, %s471_s9  }
  0xaf   : > { %s269_s5 = scalar_lea.sflag [#allocation3], %s268_s4 }
  0xb0   : > { %p359_p3 = pnand %p362_p2, %p557_p8 }
  0xb2   : > { %466 = dma.done.wait (!%p359_p3), %s269_s5, 512  }
  0xb3   : > { %468 = vsyncadd (!%p359_p3), %s269_s5, 4294966784  ;;  %s15_s14 = sadd.s32 1, %s491_s14   ;;  %s637_s9 = smov %s475_s10 }
  0xb4   : > { %p12_p5 = scmp.ge.s32.totalorder %s15_s14, 4   ;;  %s638_s10 = smov %s479_s11 }
  0xb5   : > { %s639_s11 = smov %s563_s22  ;;  %s640_s12 = smov %s487_s13 }
  0xb6   : > { %s641_s13 = smov %s643_s17  ;;  %14 = sbr.rel (!%p12_p5) target bundleno = 4 (0x4), region = 67 }
  0xbd   :  { %274 = vsyncpa [#allocation3], 1 }
  0xbe   :  { %276 = vsyncpa [#allocation3 + $0x1], 1 }

</bundles_post_ra>
